<compile_context>
chip_gen: v6e
topology: v6e:2x2x1
jax: 0.10.0
libtpu: 0.0.40
codegen_flags: <defaults>
</compile_context>

<pallas_src>
import jax
import jax.numpy as jnp
from jax.experimental import pallas as pl
from jax.experimental.pallas import tpu as pltpu

_FOLD = 8  # batch rows folded into one lane-dense (128-lane) output row


def _round_up(a, m):
    return ((a + m - 1) // m) * m


def _router_kernel(x_ref, w_ref, o_ref):
    # In-register cast to the weight compute dtype (free; VPU slack), then one
    # MXU matmul with f32 accumulation and a lane-dense store.
    x = x_ref[...].astype(w_ref.dtype)
    o_ref[...] = jnp.dot(
        x, w_ref[...], preferred_element_type=jnp.float32
    ).astype(o_ref.dtype)


def _router_forward(x, w_block, out_dim, *, rows, out_dtype):
    B, model_dim = x.shape
    R = _FOLD
    assert w_block.shape == (R * model_dim, R * out_dim)

    # Pad only to the fold granularity (R*8 = 64 original rows), NEVER to the
    # tile size: a ragged tail costs one partial grid step, not a whole-array
    # HBM copy of x.  For typical batches this pad is a no-op.
    B_pad = _round_up(B, R * 8)
    if B_pad != B:
        x = jnp.pad(x, ((0, B_pad - B), (0, 0)))

    # Free contiguous reshape; NO dtype cast here so x is read from HBM once.
    total_rows = B_pad // R
    x_folded = x.reshape(total_rows, R * model_dim)

    # Tile selection (folded rows per grid step).
    rows = max(8, _round_up(rows, 8))
    if total_rows > rows:
        tile_rows = rows
    elif total_rows >= 2048:
        # Single oversized tile: split in two so the "parallel" batch axis can
        # be sharded across both v7x TensorCores.
        tile_rows = _round_up((total_rows + 1) // 2, 8)
    else:
        tile_rows = total_rows
    grid = (pl.cdiv(total_rows, tile_rows),)

    out_folded = pl.pallas_call(
        _router_kernel,
        out_shape=jax.ShapeDtypeStruct((total_rows, R * out_dim), out_dtype),
        grid_spec=pltpu.PrefetchScalarGridSpec(
            num_scalar_prefetch=0,
            grid=grid,
            in_specs=[
                # tile over (folded) batch, x kept in its native dtype
                pl.BlockSpec((tile_rows, R * model_dim), lambda i: (i, 0)),
                # small fused weight block, resident across the whole grid
                pl.BlockSpec((R * model_dim, R * out_dim), lambda i: (0, 0)),
            ],
            out_specs=pl.BlockSpec((tile_rows, R * out_dim), lambda i: (i, 0)),
        ),
        compiler_params=pltpu.CompilerParams(
            # rows=4096 keeps the double-buffered footprint ~10 MiB, inside the
            # default scoped VMEM on v5e/v6e/v7x; only raise vmem_limit_bytes
            # here if you deliberately push `rows` well beyond that.
            dimension_semantics=("parallel",),
        ),
    )(x_folded, w_block)

    # Free un-fold, drop padded tail rows.
    return out_folded.reshape(B_pad, out_dim)[:B]


def make_router(w1, w2, *, rows=4096, compute_dtype=jnp.bfloat16,
                out_dtype=jnp.bfloat16):
    """Returns a jitted forward(x) closing over the fused router weight.

    w1 : [model_dim, D]   (torch fc1.weight, transposed)
    w2 : [D, out_dim]     (torch fc2.weight, transposed)

    The weight preparation (w1 @ w2 in f32, block-diagonal kron, cast) runs
    ONCE here -- per weight update, not per forward call.
    """
    out_dim = w2.shape[1]
    w_eff = jnp.dot(w1.astype(jnp.float32), w2.astype(jnp.float32))
    w_block = jnp.kron(jnp.eye(_FOLD, dtype=jnp.float32), w_eff).astype(compute_dtype)

    @jax.jit
    def forward(x):
        return _router_forward(x, w_block, out_dim, rows=rows, out_dtype=out_dtype)

    return forward


def router_forward(x, w1, w2, *, rows=4096, compute_dtype=jnp.bfloat16,
                   out_dtype=jnp.bfloat16):
    """One-shot convenience wrapper (re-fuses the weights; prefer make_router)."""
    out_dim = w2.shape[1]
    w_eff = jnp.dot(w1.astype(jnp.float32), w2.astype(jnp.float32))
    w_block = jnp.kron(jnp.eye(_FOLD, dtype=jnp.float32), w_eff).astype(compute_dtype)
    return _router_forward(x, w_block, out_dim, rows=rows, out_dtype=out_dtype)


if __name__ == "__main__":
    # Small shapes consistent with the module: model_dim=32, D=64, heads(out_dim)=16
    batch, model_dim, D, out_dim = 8, 32, 64, 16

    key = jax.random.PRNGKey(0)
    kx, k1, k2 = jax.random.split(key, 3)

    x = jax.random.normal(kx, (batch, model_dim), dtype=jnp.float32)
    # "PyTorch Linear"-style init (uniform +-1/sqrt(fan_in)), stored transposed
    # so the kernel can multiply directly.
    w1 = jax.random.uniform(k1, (model_dim, D), dtype=jnp.float32,
                            minval=-1.0 / jnp.sqrt(model_dim),
                            maxval=1.0 / jnp.sqrt(model_dim))
    w2 = jax.random.uniform(k2, (D, out_dim), dtype=jnp.float32,
                            minval=-1.0 / jnp.sqrt(D),
                            maxval=1.0 / jnp.sqrt(D))

    router = make_router(w1, w2)   # weight fusion hoisted out of the call path
    out = router(x)
    jax.block_until_ready(out)

    # Correctness vs plain-JAX f32 reference (bf16 compute/output -> loose tol)
    ref = x @ w1 @ w2
    assert out.shape == (batch, out_dim)
    assert jnp.allclose(out.astype(jnp.float32), ref, atol=2e-2, rtol=2e-2), \
        "mismatch vs reference"

    print("KERNEL_OK")
</pallas_src>

<mosaic_0001>
module attributes {stable_mosaic.version = 11 : i64} {
  func.func @_router_kernel(%arg0: i32, %arg1: memref<8x256xf32, #tpu.memory_space<vmem>>, %arg2: memref<256x128xbf16, #tpu.memory_space<vmem>>, %arg3: memref<8x128xbf16, #tpu.memory_space<vmem>>) attributes {dimension_semantics = [#tpu.dimension_semantics<parallel>], iteration_bounds = array<i64: 1>, scalar_prefetch = 0 : i64, scratch_operands = 0 : i64, tpu.core_type = #tpu.core_type<tc>, window_params = [{transform_indices = @transform_0, window_bounds = array<i64: 8, 256>}, {pipeline_mode = #tpu.pipeline_mode<synchronous>, transform_indices = @transform_1, window_bounds = array<i64: 256, 128>}, {transform_indices = @transform_2, window_bounds = array<i64: 8, 128>}]} {
    %c0 = arith.constant 0 : index
    %c0_0 = arith.constant 0 : index
    %0 = vector.load %arg1[%c0, %c0_0] : memref<8x256xf32, #tpu.memory_space<vmem>>, vector<8x256xf32>
    %1 = arith.truncf %0 : vector<8x256xf32> to vector<8x256xbf16>
    %c0_1 = arith.constant 0 : index
    %c0_2 = arith.constant 0 : index
    %2 = vector.load %arg2[%c0_1, %c0_2] : memref<256x128xbf16, #tpu.memory_space<vmem>>, vector<256x128xbf16>
    %cst = arith.constant dense<0.000000e+00> : vector<8x128xf32>
    %3 = tpu.matmul %1, %2, %cst {dimension_numbers = #tpu.dot_dimension_numbers<[1], [0], [0], [1], [0, 0, 1, 1], [], []>} : vector<8x256xbf16>, vector<256x128xbf16>, vector<8x128xf32> -> vector<8x128xf32>
    %4 = arith.truncf %3 : vector<8x128xf32> to vector<8x128xbf16>
    %c0_3 = arith.constant 0 : index
    %c0_4 = arith.constant 0 : index
    %5 = vector.load %arg3[%c0_3, %c0_4] : memref<8x128xbf16, #tpu.memory_space<vmem>>, vector<8x128xbf16>
    tpu.vector_store %arg3[%c0_3, %c0_4], %4 {strides = array<i32>} : memref<8x128xbf16, #tpu.memory_space<vmem>>, vector<8x128xbf16>,
    return
  }
  func.func @transform_0(%arg0: i32) -> (i32, i32) {
    %c0_i32 = arith.constant 0 : i32
    %c0_i32_0 = arith.constant 0 : i32
    return %arg0, %c0_i32 : i32, i32
  }
  func.func @transform_1(%arg0: i32) -> (i32, i32) {
    %c0_i32 = arith.constant 0 : i32
    %c0_i32_0 = arith.constant 0 : i32
    %c0_i32_1 = arith.constant 0 : i32
    return %c0_i32, %c0_i32_0 : i32, i32
  }
  func.func @transform_2(%arg0: i32) -> (i32, i32) {
    %c0_i32 = arith.constant 0 : i32
    %c0_i32_0 = arith.constant 0 : i32
    return %arg0, %c0_i32 : i32, i32
  }
}

</mosaic_0001>

<bundles_post_ra>
// kernel: forward.1
= control target key start
LH: loop header
LB: loop body
LE: loop exit
PB: predicated region body
PF: predicated region fallthrough
CT: control target
= control target key end

     0   :  { %s316_s1 = inlined_call_operand.vmem [shape: bf16[256,128], index: 1, kind: input, shape index: {}]   ;;  %s317_s0 = inlined_call_operand.vmem [shape: f32[8,256], index: 0, kind: input, shape index: {}]   ;;  %s318_s2 = inlined_call_operand.vmem [shape: bf16[8,128], index: 2, kind: output, shape index: {}]  }
   0x1   :  { %v228_v0 = vld [vmem:[%s316_s1 + $0x78] sm:$0xff]   ;;  %v230_v2 = vld [vmem:[%s316_s1 + $0x70] sm:$0xff]   ;;  %v232_v4 = vld [vmem:[%s316_s1 + $0x68] sm:$0xff]  }
   0x2   :  { %v229_v1 = vld [vmem:[%s316_s1 + $0x38] sm:$0xff]   ;;  %206 = vmatprep.subr.bf16.mxu0 %v228_v0  ;;  %v231_v3 = vld [vmem:[%s316_s1 + $0x30] sm:$0xff]   ;;  %v233_v5 = vld [vmem:[%s316_s1 + $0x28] sm:$0xff]  }
   0x3   :  { %207 = vmatpush3.bf16.msra.mxu0 %v229_v1  ;;  %v234_v6 = vld [vmem:[%s316_s1 + $0x60] sm:$0xff]   ;;  %v236_v8 = vld [vmem:[%s316_s1 + $0x58] sm:$0xff]   ;;  %v238_v10 = vld [vmem:[%s316_s1 + $0x50] sm:$0xff]  }
   0x4   :  { %208 = vmatprep.subr.bf16.mxu0 %v230_v2  ;;  %v235_v7 = vld [vmem:[%s316_s1 + $0x20] sm:$0xff]   ;;  %v237_v9 = vld [vmem:[%s316_s1 + $0x18] sm:$0xff]   ;;  %v13_v11 = vld [vmem:[%s317_s0 + $0x8] sm:$0xff] }
   0x5   :  { %v15_v12 = vpack.c.bf16 %v13_v11, %v13_v11  ;;  %v239_v13 = vld [vmem:[%s316_s1 + $0x10] sm:$0xff]   ;;  %v240_v14 = vld [vmem:[%s316_s1 + $0x48] sm:$0xff]   ;;  %v242_v16 = vld [vmem:[%s316_s1 + $0x40] sm:$0xff]  }
   0x6   :  { %v241_v15 = vld [vmem:[%s316_s1 + $0x8] sm:$0xff]   ;;  %v243_v17 = vld [vmem:[%s316_s1] sm:$0xff]  }
   0x7   :  { %209 = vmatpush3.bf16.msra.mxu0 %v231_v3  ;;  %176 = vmatprep.mubr.bf16.mxu0 %v15_v12  ;;  %v12_v18 = vld [vmem:[%s317_s0] sm:$0xff] }
   0x8   :  { %210 = vmatprep.subr.bf16.mxu0 %v232_v4  ;;  %v14_v19 = vpack.c.bf16 %v12_v18, %v12_v18 }
   0xb   :  { %211 = vmatpush3.bf16.msra.mxu0 %v233_v5 }
   0xc   :  { %212 = vmatprep.subr.bf16.mxu0 %v234_v6 }
   0xf   :  { %213 = vmatpush3.bf16.msra.mxu0 %v235_v7 }
  0x10   :  { %214 = vmatprep.subr.bf16.mxu0 %v236_v8 }
  0x13   :  { %215 = vmatpush3.bf16.msra.mxu0 %v237_v9 }
  0x14   :  { %216 = vmatprep.subr.bf16.mxu0 %v238_v10 }
  0x17   :  { %217 = vmatpush3.bf16.msra.mxu0 %v239_v13 }
  0x18   :  { %218 = vmatprep.subr.bf16.mxu0 %v240_v14 }
  0x1b   :  { %219 = vmatpush3.bf16.msra.mxu0 %v241_v15 }
  0x1c   :  { %220 = vmatprep.subr.bf16.mxu0 %v242_v16 }
  0x1f   :  { %221 = vmatpush3.bf16.msra.mxu0 %v243_v17 }
  0x22   :  { %177 = vmatmul.mubr.bf16.vlgmr.msra.gmra.mxu0 %v14_v19 }
  0xe2   :  { %v222_v20 = vpop.f32.mrf.mxu0 }
  0xe4   :  { %v223_v21 = vpop.f32.mrf.mxu0 }
  0xe5   :  { %v224_v22 = vadd.f32 %v223_v21, %v222_v20 }
  0xe6   :  { %v225_v23 = vpop.f32.mrf.mxu0 }
  0xe7   :  { %v184_v24 = vpack.c.bf16 %v224_v22, %v224_v22 }
  0xe8   :  { %v226_v25 = vpop.f32.mrf.mxu0 }
  0xe9   :  { %185 = vst [vmem:[%s318_s2] sm:$0xf] %v184_v24 }

</bundles_post_ra>
